<compile_context>
chip_gen: v7x
topology: tpu7x:2x2x1
jax: 0.10.0
libtpu: 0.0.40
codegen_flags: <defaults>
</compile_context>

<pallas_src>
import functools

import jax
import jax.numpy as jnp
from jax import lax
from jax.experimental import pallas as pl
from jax.experimental.pallas import tpu as pltpu


# ---------------------------------------------------------------------------
# helpers
# ---------------------------------------------------------------------------
def _round_up(x, m):
    return ((x + m - 1) // m) * m


def _pad2d(a, rows, cols):
    return jnp.pad(a, ((0, rows - a.shape[0]), (0, cols - a.shape[1])))


def _vmem_capacity_bytes():
    """Per-TensorCore VMEM capacity; falls back to the smallest generation (v7x)."""
    try:
        info = pltpu.get_tpu_info()
        for name in ("vmem_capacity_bytes", "vmem_bytes", "vmem_size_bytes"):
            cap = getattr(info, name, None)
            if cap:
                return int(cap)
    except Exception:
        pass
    return 64 << 20


def _pick_batch_tile(batch, per_elem_bytes, resident_bytes, vmem_budget, max_tile=64):
    """Batch elements per grid step.  Prefers >= 4 grid steps when the batch allows
    (>= 2 pipelined steps per TensorCore after v7x megacore sharding of the
    'parallel' axis), then shrinks until the working set fits the VMEM budget."""
    tile = max(1, min(max_tile, batch))
    if batch >= 8:
        tile = min(tile, max(1, batch // 4))
    while tile > 1 and resident_bytes + tile * per_elem_bytes > vmem_budget:
        tile = max(1, tile // 2)
    return tile


def _compiler_params(vmem_estimate, capacity):
    kwargs = dict(dimension_semantics=("parallel",))
    # v5e's default scoped-VMEM limit is only 16 MiB (32 MiB on v6e/v7x): raise the
    # limit whenever the estimate could plausibly exceed it, capped well under the
    # generation's physical VMEM.
    if vmem_estimate > 12 * (1 << 20):
        kwargs["vmem_limit_bytes"] = int(
            min(3 * capacity // 4, max(2 * vmem_estimate, 32 << 20)))
    return pltpu.CompilerParams(**kwargs)


# ---------------------------------------------------------------------------
# fused kernel
# ---------------------------------------------------------------------------
def _decoder_kernel(x_ref, w1_ref, w2_ref, w3_ref, wd1_ref, wd2_ref, bias_ref,
                    o_ref, h3_scr, *, tb, s8, p_dim, hidden_dim, hid_pad,
                    p_pad, out2_pad, eps):
    """One batch tile (tb elements): MLP (+LayerNorm) -> VMEM scratch -> per-batch
    deconv1(1x1)+ReLU+deconv2(k=s=10) as matmuls.  Padded lanes/rows hold zeros in
    the weights, so padding never contaminates real outputs."""
    f32 = jnp.float32
    wdt = w1_ref.dtype

    bias = bias_ref[...]                       # (8, W) slab, a single small DMA
    b1    = bias[0:1, :hid_pad]
    b2    = bias[1:2, :hid_pad]
    gamma = bias[2:3, :hid_pad]
    beta  = bias[3:4, :hid_pad]
    lnmsk = bias[4:5, :hid_pad]                # precomputed {0,1} lane mask
    b3    = bias[5:6, :p_pad]
    bd1   = bias[6:7, :hid_pad]
    bd2   = bias[7:8, :out2_pad]

    # ---------------- phase 1: per-slot MLP (rows = tb * S8) ----------------
    h = jnp.dot(x_ref[...], w1_ref[...], preferred_element_type=f32) + b1
    h = jnp.maximum(h, 0.0)                                              # act1
    h = jnp.dot(h.astype(wdt), w2_ref[...], preferred_element_type=f32) + b2

    # LayerNorm over the true hidden_dim (padded lanes are exact zeros going in).
    inv_n = jnp.float32(1.0 / hidden_dim)
    mean = jnp.sum(h, axis=-1, keepdims=True) * inv_n
    centered = h - mean
    if hid_pad != hidden_dim:       # static branch: only mask when lanes are padded
        centered = centered * lnmsk
    var = jnp.sum(centered * centered, axis=-1, keepdims=True) * inv_n
    h = centered * lax.rsqrt(var + eps) * gamma + beta
    h = jnp.maximum(h, 0.0)                                              # act2

    # fc3 -> VMEM scratch (never goes back to HBM).
    h3_scr[...] = jnp.dot(h.astype(wdt), w3_ref[...],
                          preferred_element_type=f32) + b3

    # -------- phase 2: per-batch deconv1 (1x1) -> ReLU -> deconv2 (10,10) --------
    p8 = _round_up(p_dim, 8)

    @pl.loop(0, tb)
    def _(b):
        base = pl.multiple_of(b * s8, s8)
        h3_b = h3_scr[pl.ds(base, s8), :]          # (S8, p_pad): slots x pixels
        x2 = h3_b.T.astype(wdt)                    # (p_pad, S8): small XLU transpose
        d1 = jnp.dot(x2, wd1_ref[...], preferred_element_type=f32) + bd1
        d1 = jnp.maximum(d1, 0.0)                                        # act3
        out_b = jnp.dot(d1[:p8].astype(wdt), wd2_ref[...],
                        preferred_element_type=f32) + bd2                # (p8, out2_pad)
        o_ref[b] = out_b[:p_dim].astype(o_ref.dtype)


# ---------------------------------------------------------------------------
# wrapper
# ---------------------------------------------------------------------------
def make_decoder_cnn_small(params, *, num_slots, input_dim, hidden_dim, output_size,
                           eps=1e-5, matmul_dtype=jnp.float32, max_batch_tile=64):
    """Returns apply(ins) implementing DecoderCNNSmall.forward with a single fused
    Pallas kernel.  Weight slabs are padded/cast here, once, outside the call path.
    matmul_dtype=jnp.bfloat16 uses bf16 MXU operands with f32 accumulation (valid on
    v5e / v6e / v7x)."""
    (w1, b1, w2, b2, gamma, beta, w3, b3, wd1, bd1, wd2, bd2) = params
    c_out = output_size[0]
    width, height = output_size[1] // 10, output_size[2] // 10
    p_dim = width * height                       # fc3 output features (per slot)
    out2_cols = c_out * 100                      # (c_out, 10, 10) per latent pixel

    wdt = jnp.dtype(matmul_dtype)
    itm = wdt.itemsize

    # Lane-dense padded feature dims (multiples of 128); slots only need sublane (8).
    in_pad = _round_up(input_dim, 128)
    hid_pad = _round_up(hidden_dim, 128)
    p_pad = _round_up(p_dim, 128)
    s8 = _round_up(num_slots, 8)
    out2_pad = _round_up(out2_cols, 128)
    p8 = _round_up(p_dim, 8)

    # ----- pad/cast every weight slab ONCE (outside the per-call path) -----
    w1p = _pad2d(jnp.asarray(w1, jnp.float32), in_pad, hid_pad).astype(wdt)
    w2p = _pad2d(jnp.asarray(w2, jnp.float32), hid_pad, hid_pad).astype(wdt)
    w3p = _pad2d(jnp.asarray(w3, jnp.float32), hid_pad, p_pad).astype(wdt)
    wd1p = _pad2d(jnp.asarray(wd1, jnp.float32), s8, hid_pad).astype(wdt)
    wd2p = _pad2d(jnp.asarray(wd2, jnp.float32).reshape(hidden_dim, out2_cols),
                  hid_pad, out2_pad).astype(wdt)

    # All small per-feature vectors packed into one (8, W) f32 slab.
    bias_w = max(hid_pad, p_pad, out2_pad)
    bias_slab = jnp.zeros((8, bias_w), jnp.float32)
    bias_slab = (bias_slab
                 .at[0, :hidden_dim].set(jnp.asarray(b1, jnp.float32))
                 .at[1, :hidden_dim].set(jnp.asarray(b2, jnp.float32))
                 .at[2, :hidden_dim].set(jnp.asarray(gamma, jnp.float32))
                 .at[3, :hidden_dim].set(jnp.asarray(beta, jnp.float32))
                 .at[4, :hidden_dim].set(1.0)                       # LayerNorm lane mask
                 .at[5, :p_dim].set(jnp.asarray(b3, jnp.float32))
                 .at[6, :hidden_dim].set(jnp.asarray(bd1, jnp.float32))
                 .at[7, :out2_cols].set(jnp.repeat(jnp.asarray(bd2, jnp.float32), 100)))

    # Generation-aware VMEM accounting (weights conservatively counted as
    # double-buffered, matching default BlockSpec pipelining).
    cap = _vmem_capacity_bytes()
    budget = min(int(cap * 0.6), 96 << 20)
    resident = (2 * (w1p.size + w2p.size + w3p.size + wd1p.size + wd2p.size) * itm
                + 2 * bias_slab.size * 4)
    per_elem = (2 * s8 * in_pad * itm            # input rows (double buffered)
                + 2 * p8 * out2_pad * 4          # output slab (double buffered)
                + s8 * p_pad * 4)                # h3 scratch (single)

    kern_weights = (w1p, w2p, w3p, wd1p, wd2p, bias_slab)

    def apply(ins):
        x = jnp.asarray(ins, wdt).reshape(-1, num_slots, input_dim)   # one cast, no f32 hop
        batch = x.shape[0]
        tb = _pick_batch_tile(batch, per_elem, resident, budget, max_batch_tile)
        b_pad = _round_up(batch, tb)
        xp = jnp.pad(x, ((0, b_pad - batch), (0, s8 - num_slots),
                         (0, in_pad - input_dim)))
        xp = xp.reshape(b_pad * s8, in_pad)

        kernel = functools.partial(
            _decoder_kernel, tb=tb, s8=s8, p_dim=p_dim, hidden_dim=hidden_dim,
            hid_pad=hid_pad, p_pad=p_pad, out2_pad=out2_pad, eps=eps)
        const = lambda shape: pl.BlockSpec(shape, lambda i: (0,) * len(shape))

        out = pl.pallas_call(
            kernel,
            out_shape=jax.ShapeDtypeStruct((b_pad, p_dim, out2_pad), jnp.float32),
            grid_spec=pltpu.PrefetchScalarGridSpec(
                num_scalar_prefetch=0,
                grid=(b_pad // tb,),
                in_specs=[
                    pl.BlockSpec((tb * s8, in_pad), lambda i: (i, 0)),  # batch-tile rows
                    const((in_pad, hid_pad)),                           # w1 (resident)
                    const((hid_pad, hid_pad)),                          # w2 (resident)
                    const((hid_pad, p_pad)),                            # w3 (resident)
                    const((s8, hid_pad)),                               # deconv1 weight
                    const((hid_pad, out2_pad)),                         # deconv2 weight
                    const((8, bias_w)),                                 # packed biases
                ],
                out_specs=pl.BlockSpec((tb, p_dim, out2_pad), lambda i: (i, 0, 0)),
                scratch_shapes=[pltpu.VMEM((tb * s8, p_pad), jnp.float32)],
            ),
            compiler_params=_compiler_params(resident + tb * per_elem, cap),
        )(xp, *kern_weights)

        # Reassemble the per-pixel (C_out, 10, 10) blocks into the full image
        # (pure layout plumbing on the final result).
        out = out[:batch, :, :out2_cols].reshape(batch, width, height, c_out, 10, 10)
        out = jnp.transpose(out, (0, 3, 1, 4, 2, 5))
        return out.reshape(batch, c_out, 10 * width, 10 * height)

    return apply


def decoder_cnn_small(ins, params, **config):
    """Convenience one-shot wrapper (re-pads weights each call; prefer
    make_decoder_cnn_small when calling the decoder in a loop)."""
    return make_decoder_cnn_small(params, **config)(ins)


# ---------------------------------------------------------------------------
# parameters & pure-JAX reference
# ---------------------------------------------------------------------------
def init_params(key, input_dim, hidden_dim, num_slots, output_size, dtype=jnp.float32):
    c_out = output_size[0]
    width, height = output_size[1] // 10, output_size[2] // 10
    out_dim = width * height
    ks = jax.random.split(key, 10)

    def linear(kw, kb, fan_in, shape_w, shape_b):
        bound = 1.0 / (fan_in ** 0.5)
        w = jax.random.uniform(kw, shape_w, dtype, -bound, bound)
        b = jax.random.uniform(kb, shape_b, dtype, -bound, bound)
        return w, b

    w1, b1 = linear(ks[0], ks[1], input_dim, (input_dim, hidden_dim), (hidden_dim,))
    w2, b2 = linear(ks[2], ks[3], hidden_dim, (hidden_dim, hidden_dim), (hidden_dim,))
    w3, b3 = linear(ks[4], ks[5], hidden_dim, (hidden_dim, out_dim), (out_dim,))
    gamma = jnp.ones((hidden_dim,), dtype)
    beta = jnp.zeros((hidden_dim,), dtype)
    # deconv1: ConvTranspose2d(num_slots, hidden, k=1, s=1) -> weight[s, c, 0, 0]
    wd1, bd1 = linear(ks[6], ks[7], num_slots, (num_slots, hidden_dim), (hidden_dim,))
    # deconv2: ConvTranspose2d(hidden, c_out, k=10, s=10) -> weight[c_in, c_out, ky, kx]
    wd2, bd2 = linear(ks[8], ks[9], hidden_dim, (hidden_dim, c_out, 10, 10), (c_out,))
    return (w1, b1, w2, b2, gamma, beta, w3, b3, wd1, bd1, wd2, bd2)


def _reference(ins, params, *, num_slots, input_dim, hidden_dim, output_size, eps=1e-5):
    """Pure-JAX reference of DecoderCNNSmall.forward, for correctness checking."""
    (w1, b1, w2, b2, gamma, beta, w3, b3, wd1, bd1, wd2, bd2) = params
    c_out = output_size[0]
    width, height = output_size[1] // 10, output_size[2] // 10

    h = jnp.asarray(ins, jnp.float32).reshape(-1, input_dim)
    h = jnp.maximum(h @ w1 + b1, 0.0)                              # fc1 + act1
    h = h @ w2 + b2                                                # fc2
    mean = jnp.mean(h, axis=-1, keepdims=True)
    var = jnp.mean((h - mean) ** 2, axis=-1, keepdims=True)
    h = (h - mean) / jnp.sqrt(var + eps) * gamma + beta            # LayerNorm
    h = jnp.maximum(h, 0.0)                                        # act2
    h = h @ w3 + b3                                                # fc3

    hc = h.reshape(-1, num_slots, width, height)                   # h.view(-1, S, W, H)
    d1 = jnp.einsum('bswh,sc->bcwh', hc, wd1) + bd1[None, :, None, None]
    d1 = jnp.maximum(d1, 0.0)                                      # deconv1 + act3
    d2 = jnp.einsum('bcwh,cokl->bowkhl', d1, wd2)                  # deconv2 (k=s=10)
    d2 = d2 + bd2[None, :, None, None, None, None]
    b = hc.shape[0]
    return d2.reshape(b, c_out, 10 * width, 10 * height)


# ---------------------------------------------------------------------------
if __name__ == "__main__":
    # Small shapes consistent with the module: output_size=(3, 50, 50) -> 5x5 latent map.
    batch, num_slots, input_dim, hidden_dim = 2, 4, 16, 32
    output_size = (3, 50, 50)

    key = jax.random.PRNGKey(0)
    k_x, k_p = jax.random.split(key)
    x = jax.random.normal(k_x, (batch, num_slots, input_dim), jnp.float32)
    params = init_params(k_p, input_dim, hidden_dim, num_slots, output_size)

    ref = _reference(x, params, num_slots=num_slots, input_dim=input_dim,
                     hidden_dim=hidden_dim, output_size=output_size)

    # f32 operand path (exact-precision check).
    dec_f32 = make_decoder_cnn_small(params, num_slots=num_slots, input_dim=input_dim,
                                     hidden_dim=hidden_dim, output_size=output_size)
    out = jax.block_until_ready(dec_f32(x))
    assert out.shape == (batch, output_size[0], output_size[1], output_size[2]), out.shape
    assert jnp.allclose(out, ref, atol=1e-4, rtol=1e-4), \
        float(jnp.max(jnp.abs(out - ref)))

    # bf16 MXU-operand path (f32 accumulation; valid on v5e/v6e/v7x), looser tolerance
    # because activations between matmuls are bf16.
    dec_bf16 = make_decoder_cnn_small(params, num_slots=num_slots, input_dim=input_dim,
                                      hidden_dim=hidden_dim, output_size=output_size,
                                      matmul_dtype=jnp.bfloat16)
    out_bf16 = jax.block_until_ready(dec_bf16(x))
    assert jnp.allclose(out_bf16, ref, atol=1e-1, rtol=1e-1), \
        float(jnp.max(jnp.abs(out_bf16 - ref)))

    print("KERNEL_OK")
</pallas_src>

<mosaic_0001>
module attributes {stable_mosaic.version = 11 : i64} {
  func.func @_decoder_kernel(%arg0: i32, %arg1: memref<16x128xf32, #tpu.memory_space<vmem>>, %arg2: memref<128x128xf32, #tpu.memory_space<vmem>>, %arg3: memref<128x128xf32, #tpu.memory_space<vmem>>, %arg4: memref<128x128xf32, #tpu.memory_space<vmem>>, %arg5: memref<8x128xf32, #tpu.memory_space<vmem>>, %arg6: memref<128x384xf32, #tpu.memory_space<vmem>>, %arg7: memref<8x384xf32, #tpu.memory_space<vmem>>, %arg8: memref<2x25x384xf32, #tpu.memory_space<vmem>>, %arg9: memref<16x128xf32, #tpu.memory_space<vmem>>) attributes {dimension_semantics = [#tpu.dimension_semantics<parallel>], iteration_bounds = array<i64: 1>, scalar_prefetch = 0 : i64, scratch_operands = 1 : i64, tpu.core_type = #tpu.core_type<tc>, window_params = [{transform_indices = @transform_0, window_bounds = array<i64: 16, 128>}, {pipeline_mode = #tpu.pipeline_mode<synchronous>, transform_indices = @transform_1, window_bounds = array<i64: 128, 128>}, {pipeline_mode = #tpu.pipeline_mode<synchronous>, transform_indices = @transform_2, window_bounds = array<i64: 128, 128>}, {pipeline_mode = #tpu.pipeline_mode<synchronous>, transform_indices = @transform_3, window_bounds = array<i64: 128, 128>}, {pipeline_mode = #tpu.pipeline_mode<synchronous>, transform_indices = @transform_4, window_bounds = array<i64: 8, 128>}, {pipeline_mode = #tpu.pipeline_mode<synchronous>, transform_indices = @transform_5, window_bounds = array<i64: 128, 384>}, {pipeline_mode = #tpu.pipeline_mode<synchronous>, transform_indices = @transform_6, window_bounds = array<i64: 8, 384>}, {transform_indices = @transform_7, window_bounds = array<i64: 2, 25, 384>}]} {
    %c0 = arith.constant 0 : index
    %c0_0 = arith.constant 0 : index
    %0 = vector.load %arg7[%c0, %c0_0] : memref<8x384xf32, #tpu.memory_space<vmem>>, vector<8x384xf32>
    %1 = vector.extract_strided_slice %0 {offsets = [0, 0], sizes = [1, 128], strides = [1, 1]} : vector<8x384xf32> to vector<1x128xf32>
    %2 = vector.extract_strided_slice %0 {offsets = [1, 0], sizes = [1, 128], strides = [1, 1]} : vector<8x384xf32> to vector<1x128xf32>
    %3 = vector.extract_strided_slice %0 {offsets = [2, 0], sizes = [1, 128], strides = [1, 1]} : vector<8x384xf32> to vector<1x128xf32>
    %4 = vector.extract_strided_slice %0 {offsets = [3, 0], sizes = [1, 128], strides = [1, 1]} : vector<8x384xf32> to vector<1x128xf32>
    %5 = vector.extract_strided_slice %0 {offsets = [4, 0], sizes = [1, 128], strides = [1, 1]} : vector<8x384xf32> to vector<1x128xf32>
    %6 = vector.extract_strided_slice %0 {offsets = [5, 0], sizes = [1, 128], strides = [1, 1]} : vector<8x384xf32> to vector<1x128xf32>
    %7 = vector.extract_strided_slice %0 {offsets = [6, 0], sizes = [1, 128], strides = [1, 1]} : vector<8x384xf32> to vector<1x128xf32>
    %8 = vector.extract_strided_slice %0 {offsets = [7, 0], sizes = [1, 384], strides = [1, 1]} : vector<8x384xf32> to vector<1x384xf32>
    %c0_1 = arith.constant 0 : index
    %c0_2 = arith.constant 0 : index
    %9 = vector.load %arg1[%c0_1, %c0_2] : memref<16x128xf32, #tpu.memory_space<vmem>>, vector<16x128xf32>
    %c0_3 = arith.constant 0 : index
    %c0_4 = arith.constant 0 : index
    %10 = vector.load %arg2[%c0_3, %c0_4] : memref<128x128xf32, #tpu.memory_space<vmem>>, vector<128x128xf32>
    %cst = arith.constant dense<0.000000e+00> : vector<16x128xf32>
    %11 = tpu.matmul %9, %10, %cst {dimension_numbers = #tpu.dot_dimension_numbers<[1], [0], [0], [1], [0, 0, 1, 1], [], []>} : vector<16x128xf32>, vector<128x128xf32>, vector<16x128xf32> -> vector<16x128xf32>
    %12 = vector.broadcast %1 : vector<1x128xf32> to vector<16x128xf32>
    %13 = arith.addf %11, %12 : vector<16x128xf32>
    %cst_5 = arith.constant 0.000000e+00 : f32
    %14 = vector.broadcast %cst_5 : f32 to vector<16x128xf32>
    %15 = arith.maximumf %13, %14 : vector<16x128xf32>
    %c0_6 = arith.constant 0 : index
    %c0_7 = arith.constant 0 : index
    %16 = vector.load %arg3[%c0_6, %c0_7] : memref<128x128xf32, #tpu.memory_space<vmem>>, vector<128x128xf32>
    %cst_8 = arith.constant dense<0.000000e+00> : vector<16x128xf32>
    %17 = tpu.matmul %15, %16, %cst_8 {dimension_numbers = #tpu.dot_dimension_numbers<[1], [0], [0], [1], [0, 0, 1, 1], [], []>} : vector<16x128xf32>, vector<128x128xf32>, vector<16x128xf32> -> vector<16x128xf32>
    %18 = vector.broadcast %2 : vector<1x128xf32> to vector<16x128xf32>
    %19 = arith.addf %17, %18 : vector<16x128xf32>
    %cst_9 = arith.constant dense<0.000000e+00> : vector<16xf32>
    %20 = vector.multi_reduction <add>, %19, %cst_9 [1] : vector<16x128xf32> to vector<16xf32>
    %21 = vector.shape_cast %20 : vector<16xf32> to vector<16x1xf32>
    %cst_10 = arith.constant 3.125000e-02 : f32
    %22 = vector.broadcast %cst_10 : f32 to vector<16x1xf32>
    %23 = arith.mulf %21, %22 : vector<16x1xf32>
    %24 = vector.broadcast %23 : vector<16x1xf32> to vector<16x128xf32>
    %25 = arith.subf %19, %24 : vector<16x128xf32>
    %26 = vector.broadcast %5 : vector<1x128xf32> to vector<16x128xf32>
    %27 = arith.mulf %25, %26 : vector<16x128xf32>
    %28 = arith.mulf %27, %27 : vector<16x128xf32>
    %cst_11 = arith.constant dense<0.000000e+00> : vector<16xf32>
    %29 = vector.multi_reduction <add>, %28, %cst_11 [1] : vector<16x128xf32> to vector<16xf32>
    %30 = vector.shape_cast %29 : vector<16xf32> to vector<16x1xf32>
    %cst_12 = arith.constant 3.125000e-02 : f32
    %31 = vector.broadcast %cst_12 : f32 to vector<16x1xf32>
    %32 = arith.mulf %30, %31 : vector<16x1xf32>
    %cst_13 = arith.constant 9.99999974E-6 : f32
    %33 = vector.broadcast %cst_13 : f32 to vector<16x1xf32>
    %34 = arith.addf %32, %33 : vector<16x1xf32>
    %35 = math.rsqrt %34 : vector<16x1xf32>
    %36 = vector.broadcast %35 : vector<16x1xf32> to vector<16x128xf32>
    %37 = arith.mulf %27, %36 : vector<16x128xf32>
    %38 = vector.broadcast %3 : vector<1x128xf32> to vector<16x128xf32>
    %39 = arith.mulf %37, %38 : vector<16x128xf32>
    %40 = vector.broadcast %4 : vector<1x128xf32> to vector<16x128xf32>
    %41 = arith.addf %39, %40 : vector<16x128xf32>
    %cst_14 = arith.constant 0.000000e+00 : f32
    %42 = vector.broadcast %cst_14 : f32 to vector<16x128xf32>
    %43 = arith.maximumf %41, %42 : vector<16x128xf32>
    %c0_15 = arith.constant 0 : index
    %c0_16 = arith.constant 0 : index
    %44 = vector.load %arg4[%c0_15, %c0_16] : memref<128x128xf32, #tpu.memory_space<vmem>>, vector<128x128xf32>
    %cst_17 = arith.constant dense<0.000000e+00> : vector<16x128xf32>
    %45 = tpu.matmul %43, %44, %cst_17 {dimension_numbers = #tpu.dot_dimension_numbers<[1], [0], [0], [1], [0, 0, 1, 1], [], []>} : vector<16x128xf32>, vector<128x128xf32>, vector<16x128xf32> -> vector<16x128xf32>
    %46 = vector.broadcast %6 : vector<1x128xf32> to vector<16x128xf32>
    %47 = arith.addf %45, %46 : vector<16x128xf32>
    %c0_18 = arith.constant 0 : index
    %c0_19 = arith.constant 0 : index
    %48 = vector.load %arg9[%c0_18, %c0_19] : memref<16x128xf32, #tpu.memory_space<vmem>>, vector<16x128xf32>
    tpu.vector_store %arg9[%c0_18, %c0_19], %47 {strides = array<i32>} : memref<16x128xf32, #tpu.memory_space<vmem>>, vector<16x128xf32>,
    %c0_i32 = arith.constant 0 : i32
    %c2_i32 = arith.constant 2 : i32
    %49 = arith.addi %c0_i32, %c2_i32 : i32
    %c1_i32 = arith.constant 1 : i32
    scf.for %arg10 = %c0_i32 to %49 step %c1_i32  : i32 {
      %c1_i32_21 = arith.constant 1 : i32
      %50 = arith.muli %arg10, %c1_i32_21 : i32
      %c0_i32_22 = arith.constant 0 : i32
      %51 = arith.addi %c0_i32_22, %50 : i32
      %c8_i32 = arith.constant 8 : i32
      %52 = arith.muli %51, %c8_i32 : i32
      %53 = tpu.assume_multiple %52, 8 : i32
      %54 = arith.index_cast %53 : i32 to index
      %c0_23 = arith.constant 0 : index
      %55 = vector.load %arg9[%54, %c0_23] : memref<16x128xf32, #tpu.memory_space<vmem>>, vector<8x128xf32>
      %56 = tpu.transpose %55, [1, 0] : vector<8x128xf32> -> vector<128x8xf32>
      %c0_24 = arith.constant 0 : index
      %c0_25 = arith.constant 0 : index
      %57 = vector.load %arg5[%c0_24, %c0_25] : memref<8x128xf32, #tpu.memory_space<vmem>>, vector<8x128xf32>
      %cst_26 = arith.constant dense<0.000000e+00> : vector<128x128xf32>
      %58 = tpu.matmul %56, %57, %cst_26 {dimension_numbers = #tpu.dot_dimension_numbers<[1], [0], [0], [1], [0, 0, 1, 1], [], []>} : vector<128x8xf32>, vector<8x128xf32>, vector<128x128xf32> -> vector<128x128xf32>
      %59 = vector.broadcast %7 : vector<1x128xf32> to vector<128x128xf32>
      %60 = arith.addf %58, %59 : vector<128x128xf32>
      %cst_27 = arith.constant 0.000000e+00 : f32
      %61 = vector.broadcast %cst_27 : f32 to vector<128x128xf32>
      %62 = arith.maximumf %60, %61 : vector<128x128xf32>
      %63 = vector.extract_strided_slice %62 {offsets = [0, 0], sizes = [32, 128], strides = [1, 1]} : vector<128x128xf32> to vector<32x128xf32>
      %c0_28 = arith.constant 0 : index
      %c0_29 = arith.constant 0 : index
      %64 = vector.load %arg6[%c0_28, %c0_29] : memref<128x384xf32, #tpu.memory_space<vmem>>, vector<128x384xf32>
      %cst_30 = arith.constant dense<0.000000e+00> : vector<32x384xf32>
      %65 = tpu.matmul %63, %64, %cst_30 {dimension_numbers = #tpu.dot_dimension_numbers<[1], [0], [0], [1], [0, 0, 1, 1], [], []>} : vector<32x128xf32>, vector<128x384xf32>, vector<32x384xf32> -> vector<32x384xf32>
      %66 = vector.broadcast %8 : vector<1x384xf32> to vector<32x384xf32>
      %67 = arith.addf %65, %66 : vector<32x384xf32>
      %68 = vector.extract_strided_slice %67 {offsets = [0, 0], sizes = [25, 384], strides = [1, 1]} : vector<32x384xf32> to vector<25x384xf32>
      %69 = arith.index_cast %51 : i32 to index
      %c0_31 = arith.constant 0 : index
      %c0_32 = arith.constant 0 : index
      %70 = vector.load %arg8[%69, %c0_31, %c0_32] : memref<2x25x384xf32, #tpu.memory_space<vmem>>, vector<1x25x384xf32>
      %71 = vector.shape_cast %70 : vector<1x25x384xf32> to vector<25x384xf32>
      %72 = vector.shape_cast %68 : vector<25x384xf32> to vector<1x25x384xf32>
      tpu.vector_store %arg8[%69, %c0_31, %c0_32], %72 {strides = array<i32>} : memref<2x25x384xf32, #tpu.memory_space<vmem>>, vector<1x25x384xf32>,
    }
    %c2_i32_20 = arith.constant 2 : i32
    return
  }
  func.func @transform_0(%arg0: i32) -> (i32, i32) {
    %c0_i32 = arith.constant 0 : i32
    %c0_i32_0 = arith.constant 0 : i32
    return %arg0, %c0_i32 : i32, i32
  }
  func.func @transform_1(%arg0: i32) -> (i32, i32) {
    %c0_i32 = arith.constant 0 : i32
    %c0_i32_0 = arith.constant 0 : i32
    %c0_i32_1 = arith.constant 0 : i32
    return %c0_i32, %c0_i32_0 : i32, i32
  }
  func.func @transform_2(%arg0: i32) -> (i32, i32) {
    %c0_i32 = arith.constant 0 : i32
    %c0_i32_0 = arith.constant 0 : i32
    %c0_i32_1 = arith.constant 0 : i32
    return %c0_i32, %c0_i32_0 : i32, i32
  }
  func.func @transform_3(%arg0: i32) -> (i32, i32) {
    %c0_i32 = arith.constant 0 : i32
    %c0_i32_0 = arith.constant 0 : i32
    %c0_i32_1 = arith.constant 0 : i32
    return %c0_i32, %c0_i32_0 : i32, i32
  }
  func.func @transform_4(%arg0: i32) -> (i32, i32) {
    %c0_i32 = arith.constant 0 : i32
    %c0_i32_0 = arith.constant 0 : i32
    %c0_i32_1 = arith.constant 0 : i32
    return %c0_i32, %c0_i32_0 : i32, i32
  }
  func.func @transform_5(%arg0: i32) -> (i32, i32) {
    %c0_i32 = arith.constant 0 : i32
    %c0_i32_0 = arith.constant 0 : i32
    %c0_i32_1 = arith.constant 0 : i32
    return %c0_i32, %c0_i32_0 : i32, i32
  }
  func.func @transform_6(%arg0: i32) -> (i32, i32) {
    %c0_i32 = arith.constant 0 : i32
    %c0_i32_0 = arith.constant 0 : i32
    %c0_i32_1 = arith.constant 0 : i32
    return %c0_i32, %c0_i32_0 : i32, i32
  }
  func.func @transform_7(%arg0: i32) -> (i32, i32, i32) {
    %c0_i32 = arith.constant 0 : i32
    %c0_i32_0 = arith.constant 0 : i32
    %c0_i32_1 = arith.constant 0 : i32
    return %arg0, %c0_i32, %c0_i32_0 : i32, i32, i32
  }
}

</mosaic_0001>

<bundles_post_ra>
// kernel: tpu_custom_call.1
= control target key start
LH: loop header
LB: loop body
LE: loop exit
PB: predicated region body
PF: predicated region fallthrough
CT: control target
= control target key end

     0   :  { %12 = vsyncpa [#allocation4], 0  ;;  %s1771_s0 = inlined_call_operand.hbm [shape: f32[16,128], index: 0, kind: input, shape index: {}]   ;;  %s1772_s1 = inlined_call_operand.hbm [shape: f32[128,128], index: 1, kind: input, shape index: {}]   ;;  %s1773_s2 = inlined_call_operand.hbm [shape: f32[128,128], index: 2, kind: input, shape index: {}]   ;;  %s1774_s3 = inlined_call_operand.hbm [shape: f32[128,128], index: 3, kind: input, shape index: {}]   ;;  %s1775_s4 = inlined_call_operand.vmem [shape: f32[8,128], index: 4, kind: input, shape index: {}]   ;;  %s1776_s5 = inlined_call_operand.hbm [shape: f32[128,384], index: 5, kind: input, shape index: {}]   ;;  %s1777_s6 = inlined_call_operand.hbm [shape: f32[8,384], index: 6, kind: input, shape index: {}]   ;;  %s1778_s7 = inlined_call_operand.vmem [shape: f32[2,25,384], index: 7, kind: output, shape index: {}]  }
   0x1   :  { %13 = vsyncpa [#allocation6], 0 }
   0x2   :  { %14 = vsyncpa [#allocation9], 0 }
   0x3   :  { %15 = vsyncpa [#allocation12], 0  ;;  %s1550_s24 = smov [#allocation5]   ;;  %s1551_s26 = smov [#allocation8]  }
   0x4   :  { %s33_s25 = sshll.u32 %s1550_s24, 4  ;;  %s57_s27 = sshll.u32 %s1551_s26, 4  ;;  %s34_s25 = int_to_ptr.vmem [resolvable:$true] %s33_s25  ;;  %s1601_s27 = int_to_ptr.vmem [resolvable:$true] %s57_s27 }
   0x5   :  { %s1402_s30 = scalar_lea.hbm %s1772_s1, 2048 }
   0x6   :  { %p1403_p0 = scmp.ne.s32.totalorder %s1772_s1, %s1402_s30  ;;  %p1406_p1 = scmp.lt.u32.totalorder %s1402_s30, %s1772_s1 }
   0x8   :  { %p1408_p2 = pnand %p1406_p1, %p1403_p0 }
   0xa   :  { %1411 = shalt.err (!%p1408_p2)
}
   0xb   :  { %s1412_s12 = scalar_lea.vmem %s34_s25, 2048  ;;  %p1417_p4 = scmp.lt.s32.totalorder %s34_s25, %s34_s25 }
   0xc   :  { %p1413_p3 = scmp.ne.s32.totalorder %s34_s25, %s1412_s12  ;;  %p1418_p5 = scmp.lt.s32.totalorder %s1412_s12, %s1412_s12 }
   0xe   :  { %p1419_p6 = por %p1418_p5, %p1417_p4 }
  0x10   :  { %p1420_p7 = pnand %p1419_p6, %p1413_p3 }
  0x12   :  { %1423 = shalt.err (!%p1420_p7)
}
  0x13   :  { %s1552_s13 = smov 128   ;;  %s1553_s14 = smov 8  }
  0x14   :  { %39 = dma.hbm_to_vmem [thread:$0]  %s1772_s1, 2048, %s34_s25, [#allocation6], %s1552_s13, %s1552_s13, %s1553_s14  }
  0x15   :  { %s1424_s19 = scalar_lea.hbm %s1774_s3, 2048 }
  0x16   :  { %p1425_p8 = scmp.ne.s32.totalorder %s1774_s3, %s1424_s19  ;;  %p1428_p9 = scmp.lt.u32.totalorder %s1424_s19, %s1774_s3 }
  0x18   :  { %p1430_p10 = pnand %p1428_p9, %p1425_p8 }
  0x1a   :  { %1433 = shalt.err (!%p1430_p10)
}
  0x1b   :  { %s1434_s24 = scalar_lea.vmem %s1601_s27, 2048  ;;  %p1439_p12 = scmp.lt.s32.totalorder %s1601_s27, %s1601_s27 }
  0x1c   :  { %p1435_p11 = scmp.ne.s32.totalorder %s1601_s27, %s1434_s24  ;;  %p1440_p13 = scmp.lt.s32.totalorder %s1434_s24, %s1434_s24 }
  0x1e   :  { %p1441_p0 = por %p1440_p13, %p1439_p12 }
  0x20   :  { %p1442_p1 = pnand %p1441_p0, %p1435_p11 }
  0x22   :  { %1445 = shalt.err (!%p1442_p1)
}
  0x23   :  { %63 = dma.hbm_to_vmem [thread:$0]  %s1774_s3, 2048, %s1601_s27, [#allocation9], %s1552_s13, %s1552_s13, %s1553_s14  }
  0x24   :  { %s1554_s26 = smov [#allocation3]   ;;  %s1555_s29 = smov [#allocation7]  }
  0x25   :  { %s21_s28 = sshll.u32 %s1554_s26, 4  ;;  %s45_s30 = sshll.u32 %s1555_s29, 4  ;;  %s22_s28 = int_to_ptr.vmem [resolvable:$true] %s21_s28  ;;  %s1638_s30 = int_to_ptr.vmem [resolvable:$true] %s45_s30 }
  0x26   :  { %s1446_s10 = scalar_lea.hbm %s1771_s0, 256 }
  0x27   :  { %p1447_p2 = scmp.ne.s32.totalorder %s1771_s0, %s1446_s10  ;;  %p1450_p3 = scmp.lt.u32.totalorder %s1446_s10, %s1771_s0 }
  0x29   :  { %p1452_p4 = pnand %p1450_p3, %p1447_p2 }
  0x2b   :  { %1455 = shalt.err (!%p1452_p4)
}
  0x2c   :  { %s1456_s3 = scalar_lea.vmem %s22_s28, 256  ;;  %p1461_p6 = scmp.lt.s32.totalorder %s22_s28, %s22_s28 }
  0x2d   :  { %p1457_p5 = scmp.ne.s32.totalorder %s22_s28, %s1456_s3  ;;  %p1462_p7 = scmp.lt.s32.totalorder %s1456_s3, %s1456_s3 }
  0x2f   :  { %p1463_p8 = por %p1462_p7, %p1461_p6 }
  0x31   :  { %p1464_p9 = pnand %p1463_p8, %p1457_p5 }
  0x33   :  { %1467 = shalt.err (!%p1464_p9)
}
  0x34   :  { %27 = dma.hbm_to_vmem [thread:$0]  %s1771_s0, 256, %s22_s28, [#allocation4], %s1552_s13, %s1552_s13, %s1553_s14  }
  0x35   :  { %s1468_s20 = scalar_lea.hbm %s1773_s2, 2048 }
  0x36   :  { %p1469_p10 = scmp.ne.s32.totalorder %s1773_s2, %s1468_s20  ;;  %p1472_p11 = scmp.lt.u32.totalorder %s1468_s20, %s1773_s2 }
  0x38   :  { %p1474_p12 = pnand %p1472_p11, %p1469_p10 }
  0x3a   :  { %1477 = shalt.err (!%p1474_p12)
}
  0x3b   :  { %s1478_s1 = scalar_lea.vmem %s1638_s30, 2048  ;;  %p1483_p0 = scmp.lt.s32.totalorder %s1638_s30, %s1638_s30 }
  0x3c   :  { %p1479_p13 = scmp.ne.s32.totalorder %s1638_s30, %s1478_s1  ;;  %p1484_p1 = scmp.lt.s32.totalorder %s1478_s1, %s1478_s1 }
  0x3e   :  { %p1485_p2 = por %p1484_p1, %p1483_p0 }
  0x40   :  { %p1486_p3 = pnand %p1485_p2, %p1479_p13 }
  0x42   :  { %1489 = shalt.err (!%p1486_p3)
}
  0x43   :  { %51 = dma.hbm_to_vmem [thread:$0]  %s1773_s2, 2048, %s1638_s30, [#allocation6], %s1552_s13, %s1552_s13, %s1553_s14  }
  0x44   :  { %s1556_s26 = smov [#allocation10]   ;;  %s1490_s9 = scalar_lea.hbm %s1776_s5, 6144 }
  0x45   :  { %s71_s28 = sshll.u32 %s1556_s26, 4  ;;  %p1491_p4 = scmp.ne.s32.totalorder %s1776_s5, %s1490_s9  ;;  %s72_s28 = int_to_ptr.vmem [resolvable:$true] %s71_s28 }
  0x46   :  { %p1494_p5 = scmp.lt.u32.totalorder %s1490_s9, %s1776_s5 }
  0x48   :  { %p1496_p6 = pnand %p1494_p5, %p1491_p4 }
  0x4a   :  { %1499 = shalt.err (!%p1496_p6)
}
  0x4b   :  { %s1500_s16 = scalar_lea.vmem %s72_s28, 6144  ;;  %p1505_p8 = scmp.lt.s32.totalorder %s72_s28, %s72_s28 }
  0x4c   :  { %p1501_p7 = scmp.ne.s32.totalorder %s72_s28, %s1500_s16  ;;  %p1506_p9 = scmp.lt.s32.totalorder %s1500_s16, %s1500_s16 }
  0x4e   :  { %p1507_p10 = por %p1506_p9, %p1505_p8 }
  0x50   :  { %p1508_p11 = pnand %p1507_p10, %p1501_p7 }
  0x52   :  { %1511 = shalt.err (!%p1508_p11)
}
  0x53   :  { %s1557_s2 = smov 384   ;;  %s1558_s13 = smov 24  }
  0x54   :  { %77 = dma.hbm_to_vmem [thread:$0]  %s1776_s5, 6144, %s72_s28, [#allocation9], %s1557_s2, %s1557_s2, %s1558_s13  }
  0x55   :  { %s1559_s3 = smov [#allocation11]   ;;  %s1512_s19 = scalar_lea.hbm %s1777_s6, 384 }
  0x56   :  { %s84_s27 = sshll.u32 %s1559_s3, 4  ;;  %p1513_p12 = scmp.ne.s32.totalorder %s1777_s6, %s1512_s19  ;;  %s85_s27 = int_to_ptr.vmem [resolvable:$true] %s84_s27 }
  0x57   :  { %p1516_p13 = scmp.lt.u32.totalorder %s1512_s19, %s1777_s6 }
  0x59   :  { %p1518_p0 = pnand %p1516_p13, %p1513_p12 }
  0x5b   :  { %1521 = shalt.err (!%p1518_p0)
}
  0x5c   :  { %s1522_s24 = scalar_lea.vmem %s85_s27, 384  ;;  %p1527_p2 = scmp.lt.s32.totalorder %s85_s27, %s85_s27 }
  0x5d   :  { %p1523_p1 = scmp.ne.s32.totalorder %s85_s27, %s1522_s24  ;;  %p1528_p3 = scmp.lt.s32.totalorder %s1522_s24, %s1522_s24 }
  0x5f   :  { %p1529_p4 = por %p1528_p3, %p1527_p2 }
  0x61   :  { %p1530_p5 = pnand %p1529_p4, %p1523_p1 }
  0x63   :  { %1533 = shalt.err (!%p1530_p5)
}
  0x64   :  { %87 = dma.hbm_to_vmem [thread:$0]  %s1777_s6, 384, %s85_s27, [#allocation12]  }
  0x65   :  { %1538 = dma.done.wait [#allocation4], 256  }
  0x66   :  { %1539 = vsyncadd [#allocation4], 4294967040 }
  0x67   :  { %1540 = dma.done.wait [#allocation6], 4096  }
  0x68   :  { %1541 = vsyncadd [#allocation6], 4294963200 }
  0x69   :  { %1542 = dma.done.wait [#allocation9], 8192  }
  0x6a   :  { %1543 = vsyncadd [#allocation9], 4294959104 }
  0x6b   :  { %1544 = dma.done.wait [#allocation12], 384  }
  0x6c   :  { %1545 = vsyncadd [#allocation12], 4294966912  ;;  %v1699_v0 = vld [vmem:[#allocation11 + $0x8] sm:$0xff]  ;;  %v1701_v1 = vld [vmem:[#allocation11 + $0x10] sm:$0xff]  ;;  %v127_v52 = vlaneseq  ;;  %s1719_s6 = smov 0  }
  0x6d   :  { %v111_v2 = vld [vmem:[#allocation5] sm:$0xff]  ;;  %v112_v3 = vld [vmem:[#allocation5 + $0x8] sm:$0xff]  ;;  %v113_v4 = vld [vmem:[#allocation5 + $0x10] sm:$0xff] }
  0x6e   :  { %v114_v5 = vld [vmem:[#allocation5 + $0x18] sm:$0xff]  ;;  %v1219_v6 = vpack.c.bf16 %v112_v3, %v111_v2  ;;  %v115_v8 = vld [vmem:[#allocation5 + $0x20] sm:$0xff]  ;;  %v116_v9 = vld [vmem:[#allocation5 + $0x28] sm:$0xff]  ;;  %v1703_v53 = vshrl.u32 %v127_v52, 7 }
  0x6f   :  { %v1223_v7 = vpack.c.bf16 %v114_v5, %v113_v4  ;;  %v117_v10 = vld [vmem:[#allocation5 + $0x30] sm:$0xff]  ;;  %v1227_v11 = vpack.c.bf16 %v116_v9, %v115_v8  ;;  %v118_v12 = vld [vmem:[#allocation5 + $0x38] sm:$0xff]  ;;  %v208_v14 = vld [vmem:[#allocation7] sm:$0xff] }
  0x70   :  { %1220 = vmatprep.subr.bf16.mxu0 %v1219_v6  ;;  %v109_v13 = vld [vmem:[#allocation3] sm:$0xff]  ;;  %v209_v15 = vld [vmem:[#allocation7 + $0x8] sm:$0xff]  ;;  %v211_v17 = vld [vmem:[#allocation7 + $0x18] sm:$0xff]  ;;  %v1231_v22 = vpack.c.bf16 %v118_v12, %v117_v10  ;;  %v129_v54 = vsub.s32 0, %v1703_v53  ;;  %v226_v63 = vsub.s32 1, %v1703_v53 }
  0x71   :  { %1222 = vmatpush3.bf16.msra.mxu0 %v1219_v6  ;;  %1082 = vmatprep.mubr.f32.mxu0 %v109_v13  ;;  %v210_v16 = vld [vmem:[#allocation7 + $0x10] sm:$0xff]  ;;  %v1251_v18 = vpack.c.bf16 %v209_v15, %v208_v14  ;;  %v212_v20 = vld [vmem:[#allocation7 + $0x20] sm:$0xff]  ;;  %v213_v21 = vld [vmem:[#allocation7 + $0x28] sm:$0xff]  ;;  %v313_v13 = vsub.s32 4, %v1703_v53 }
  0x72   :  { %1224 = vmatprep.subr.bf16.mxu0 %v1223_v7  ;;  %v1255_v19 = vpack.c.bf16 %v211_v17, %v210_v16  ;;  %v119_v23 = vld [vmem:[#allocation5 + $0x40] sm:$0xff]  ;;  %v120_v24 = vld [vmem:[#allocation5 + $0x48] sm:$0xff]  ;;  %v1259_v25 = vpack.c.bf16 %v213_v21, %v212_v20  ;;  %v214_v26 = vld [vmem:[#allocation7 + $0x30] sm:$0xff] }
  0x73   :  { %1252 = vmatprep.subr.bf16.mxu1 %v1251_v18  ;;  %v215_v27 = vld [vmem:[#allocation7 + $0x38] sm:$0xff]  ;;  %v1235_v28 = vpack.c.bf16 %v120_v24, %v119_v23  ;;  %v121_v29 = vld [vmem:[#allocation5 + $0x50] sm:$0xff]  ;;  %v216_v32 = vld [vmem:[#allocation7 + $0x40] sm:$0xff] }
  0x74   :  { %1254 = vmatpush3.bf16.msra.mxu1 %v1251_v18  ;;  %v122_v30 = vld [vmem:[#allocation5 + $0x58] sm:$0xff]  ;;  %v1263_v31 = vpack.c.bf16 %v215_v27, %v214_v26  ;;  %v217_v33 = vld [vmem:[#allocation7 + $0x48] sm:$0xff]  ;;  %v123_v35 = vld [vmem:[#allocation5 + $0x60] sm:$0xff] }
  0x75   :  { %1226 = vmatpush3.bf16.msra.mxu0 %v1223_v7  ;;  %1256 = vmatprep.subr.bf16.mxu1 %v1255_v19  ;;  %v1239_v34 = vpack.c.bf16 %v122_v30, %v121_v29  ;;  %v124_v36 = vld [vmem:[#allocation5 + $0x68] sm:$0xff]  ;;  %v1267_v37 = vpack.c.bf16 %v217_v33, %v216_v32  ;;  %v218_v38 = vld [vmem:[#allocation7 + $0x50] sm:$0xff]  ;;  %v219_v39 = vld [vmem:[#allocation7 + $0x58] sm:$0xff] }
  0x76   :  { %1228 = vmatprep.subr.bf16.mxu0 %v1227_v11  ;;  %v1243_v40 = vpack.c.bf16 %v124_v36, %v123_v35  ;;  %v125_v41 = vld [vmem:[#allocation5 + $0x70] sm:$0xff]  ;;  %v126_v42 = vld [vmem:[#allocation5 + $0x78] sm:$0xff]  ;;  %v1271_v43 = vpack.c.bf16 %v219_v39, %v218_v38  ;;  %v220_v44 = vld [vmem:[#allocation7 + $0x60] sm:$0xff] }
  0x77   :  { %v221_v45 = vld [vmem:[#allocation7 + $0x68] sm:$0xff]  ;;  %v1247_v46 = vpack.c.bf16 %v126_v42, %v125_v41  ;;  %v110_v48 = vld [vmem:[#allocation3 + $0x8] sm:$0xff]  ;;  %v222_v49 = vld [vmem:[#allocation7 + $0x70] sm:$0xff] }
  0x78   :  { %1258 = vmatpush3.bf16.msra.mxu1 %v1255_v19  ;;  %v1275_v47 = vpack.c.bf16 %v221_v45, %v220_v44  ;;  %v223_v50 = vld [vmem:[#allocation7 + $0x78] sm:$0xff]  ;;  %v1706_v55 = vld [vmem:[#allocation11] sm:$0xff]  ;;  %v346_v8 = vld [vmem:[#allocation8 + $0x8] sm:$0xff] }
  0x79   :  { %1230 = vmatpush3.bf16.msra.mxu0 %v1227_v11  ;;  %1260 = vmatprep.subr.bf16.mxu1 %v1259_v25  ;;  %v1279_v51 = vpack.c.bf16 %v223_v50, %v222_v49  ;;  %v130_v56 = vrot.slane %v1706_v55, %v129_v54  ;;  %v227_v2 = vrot.slane %v1706_v55, %v226_v63  ;;  %v345_v7 = vld [vmem:[#allocation8] sm:$0xff]  ;;  %v347_v9 = vld [vmem:[#allocation8 + $0x10] sm:$0xff]  ;;  %v348_v11 = vld [vmem:[#allocation8 + $0x18] sm:$0xff]  ;;  %v333_v49 = vsub.s32 2, %v1703_v53 }
  0x7a   :  { %1232 = vmatprep.subr.bf16.mxu0 %v1231_v22  ;;  %v1283_v10 = vpack.c.bf16 %v346_v8, %v345_v7  ;;  %v1287_v12 = vpack.c.bf16 %v348_v11, %v347_v9  ;;  %v314_v16 = vrot.slane %v1706_v55, %v313_v13  ;;  %v350_v26 = vld [vmem:[#allocation8 + $0x28] sm:$0xff]  ;;  %v352_v29 = vld [vmem:[#allocation8 + $0x38] sm:$0xff]  ;;  %v339_v50 = vsub.s32 3, %v1703_v53 }
  0x7b   :  { %v354_v32 = vld [vmem:[#allocation8 + $0x48] sm:$0xff]  ;;  %v356_v35 = vld [vmem:[#allocation8 + $0x58] sm:$0xff] }
  0x7c   :  { %1262 = vmatpush3.bf16.msra.mxu1 %v1259_v25  ;;  %v349_v25 = vld [vmem:[#allocation8 + $0x20] sm:$0xff]  ;;  %v358_v38 = vld [vmem:[#allocation8 + $0x68] sm:$0xff]  ;;  %v360_v41 = vld [vmem:[#allocation8 + $0x78] sm:$0xff] }
  0x7d   :  { %1234 = vmatpush3.bf16.msra.mxu0 %v1231_v22  ;;  %1264 = vmatprep.subr.bf16.mxu1 %v1263_v31  ;;  %v1291_v27 = vpack.c.bf16 %v350_v26, %v349_v25 }
  0x7e   :  { %1236 = vmatprep.subr.bf16.mxu0 %v1235_v28 }
  0x80   :  { %1266 = vmatpush3.bf16.msra.mxu1 %v1263_v31  ;;  %v353_v31 = vld [vmem:[#allocation8 + $0x40] sm:$0xff] }
  0x81   :  { %1238 = vmatpush3.bf16.msra.mxu0 %v1235_v28  ;;  %1268 = vmatprep.subr.bf16.mxu1 %v1267_v37  ;;  %v351_v28 = vld [vmem:[#allocation8 + $0x30] sm:$0xff]  ;;  %v1299_v33 = vpack.c.bf16 %v354_v32, %v353_v31 }
  0x82   :  { %1240 = vmatprep.subr.bf16.mxu0 %v1239_v34  ;;  %v1295_v30 = vpack.c.bf16 %v352_v29, %v351_v28 }
  0x84   :  { %1270 = vmatpush3.bf16.msra.mxu1 %v1267_v37  ;;  %v357_v37 = vld [vmem:[#allocation8 + $0x60] sm:$0xff] }
  0x85   :  { %1242 = vmatpush3.bf16.msra.mxu0 %v1239_v34  ;;  %1272 = vmatprep.subr.bf16.mxu1 %v1271_v43  ;;  %v355_v34 = vld [vmem:[#allocation8 + $0x50] sm:$0xff]  ;;  %v1307_v39 = vpack.c.bf16 %v358_v38, %v357_v37 }
  0x86   :  { %1244 = vmatprep.subr.bf16.mxu0 %v1243_v40  ;;  %v1303_v36 = vpack.c.bf16 %v356_v35, %v355_v34 }
  0x88   :  { %1274 = vmatpush3.bf16.msra.mxu1 %v1271_v43 }
  0x89   :  { %1246 = vmatpush3.bf16.msra.mxu0 %v1243_v40  ;;  %1276 = vmatprep.subr.bf16.mxu1 %v1275_v47  ;;  %v359_v40 = vld [vmem:[#allocation8 + $0x70] sm:$0xff] }
  0x8a   :  { %1248 = vmatprep.subr.bf16.mxu0 %v1247_v46  ;;  %v1311_v42 = vpack.c.bf16 %v360_v41, %v359_v40 }
  0x8c   :  { %1278 = vmatpush3.bf16.msra.mxu1 %v1275_v47 }
  0x8d   :  { %1250 = vmatpush3.bf16.msra.mxu0 %v1247_v46  ;;  %1280 = vmatprep.subr.bf16.mxu1 %v1279_v51 }
  0x8e   :  { %1284 = vmatprep.subr.bf16.mxu0 %v1283_v10 }
  0x90   :  { %1083 = vmatmul.mubr.f32.vlgmr.msra.gmra.mrb[0].mxu0 %v110_v48  ;;  %1282 = vmatpush3.bf16.msra.mxu1 %v1279_v51  ;;  %v334_v51 = vrot.slane %v1706_v55, %v333_v49 }
  0x91   :  { %1286 = vmatpush3.bf16.msra.mxu0 %v1283_v10 }
  0x92   :  { %1288 = vmatprep.subr.bf16.mxu0 %v1287_v12 }
  0x95   :  { %1290 = vmatpush3.bf16.msra.mxu0 %v1287_v12 }
  0x96   :  { %1292 = vmatprep.subr.bf16.mxu0 %v1291_v27 }
  0x99   :  { %1294 = vmatpush3.bf16.msra.mxu0 %v1291_v27 }
  0x9a   :  { %1296 = vmatprep.subr.bf16.mxu0 %v1295_v30 }
  0x9d   :  { %1298 = vmatpush3.bf16.msra.mxu0 %v1295_v30 }
  0x9e   :  { %1300 = vmatprep.subr.bf16.mxu0 %v1299_v33 }
  0xa1   :  { %1302 = vmatpush3.bf16.msra.mxu0 %v1299_v33 }
  0xa2   :  { %1304 = vmatprep.subr.bf16.mxu0 %v1303_v36 }
  0xa5   :  { %1306 = vmatpush3.bf16.msra.mxu0 %v1303_v36 }
  0xa6   :  { %1308 = vmatprep.subr.bf16.mxu0 %v1307_v39 }
  0xa9   :  { %1310 = vmatpush3.bf16.msra.mxu0 %v1307_v39 }
  0xaa   :  { %1312 = vmatprep.subr.bf16.mxu0 %v1311_v42 }
  0xad   :  { %1314 = vmatpush3.bf16.msra.mxu0 %v1311_v42 }
 0x163   :  { %v1084_v57 = vpop.f32.mrb[0].mxu0 }
 0x164   :  { %v203_v58 = vadd.f32 %v1084_v57, %v130_v56  ;;  %v197_v59 = vpop.f32.mrb[1].mxu0 }
 0x165   :  { %v198_v60 = vadd.f32 %v197_v59, %v130_v56  ;;  %v340_v56 = vrot.slane %v1706_v55, %v339_v50 }
 0x166   :  { %v207_v62 = vmax.f32 %v203_v58, 0.0 }
 0x167   :  { %v206_v61 = vmax.f32 %v198_v60, 0.0 }
 0x169   :  { %1117 = vmatprep.mubr.f32.mxu1 %v206_v61 }
 0x16a   :  { %1118 = vmatmul.mubr.f32.vlgmr.msra.gmra.mrb[0].mxu1 %v207_v62 }
 0x23d   :  { %v1119_v3 = vpop.f32.mrb[0].mxu1 }
 0x23e   :  { %v294_v4 = vpop.f32.mrb[1].mxu1  ;;  %v300_v6 = vadd.f32 %v1119_v3, %v227_v2  ;;  %v363_v3 = vsub.s32 5, %v1703_v53 }
 0x23f   :  { %v295_v5 = vadd.f32 %v294_v4, %v227_v2 }
 0x240   :  { %v364_v4 = vrot.slane %v1706_v55, %v363_v3 }
 0x241   :  { %303 = vadd.xlane.f32.xlu0 %v295_v5 }
 0x245   :  { %305 = vadd.xlane.f32.xlu0 %v300_v6 }
 0x2ce   :  { %v304_v14 = vpop.xlane.xlu0 %303 }
 0x2cf   :  { %v307_v15 = vmul.f32 0.03125, %v304_v14 }
 0x2d1   :  { %v309_v17 = vsub.f32 %v295_v5, %v307_v15 }
 0x2d2   :  { %v306_v18 = vpop.xlane.xlu0 %305 }
 0x2d3   :  { %v308_v19 = vmul.f32 0.03125, %v306_v18  ;;  %v315_v20 = vmul.f32 %v314_v16, %v309_v17 }
 0x2d5   :  { %v310_v21 = vsub.f32 %v300_v6, %v308_v19  ;;  %v317_v22 = vmul.f32 %v315_v20, %v315_v20 }
 0x2d7   :  { %319 = vadd.xlane.f32.xlu1 %v317_v22  ;;  %v316_v23 = vmul.f32 %v314_v16, %v310_v21 }
 0x2d9   :  { %v318_v24 = vmul.f32 %v316_v23, %v316_v23 }
 0x2db   :  { %321 = vadd.xlane.f32.xlu1 %v318_v24 }
 0x364   :  { %v320_v43 = vpop.xlane.xlu1 %319 }
 0x365   :  { %v323_v44 = vmul.f32 0.03125, %v320_v43 }
 0x367   :  { %v325_v45 = vadd.f32 1e-05, %v323_v44 }
 0x368   :  { %v322_v46 = vpop.xlane.xlu1 %321 }
 0x369   :  { %1398 = vrsqrt.f32 %v325_v45  ;;  %v324_v47 = vmul.f32 0.03125, %v322_v46 }
 0x36b   :  { %v326_v48 = vadd.f32 1e-05, %v324_v47 }
 0x36d   :  { %1400 = vrsqrt.f32 %v326_v48 }
 0x373   :  { %v1399_v52 = vpop.eup %1398 }
 0x374   :  { %v329_v54 = vmul.f32 %v1399_v52, %v315_v20 }
 0x376   :  { %v335_v57 = vmul.f32 %v334_v51, %v329_v54 }
 0x377   :  { %v1401_v58 = vpop.eup %1400 }
 0x378   :  { %v330_v59 = vmul.f32 %v1401_v58, %v316_v23  ;;  %v341_v60 = vadd.f32 %v340_v56, %v335_v57 }
 0x37a   :  { %v343_v61 = vmax.f32 %v341_v60, 0.0  ;;  %v336_v62 = vmul.f32 %v334_v51, %v330_v59 }
 0x37c   :  { %1152 = vmatprep.mubr.f32.mxu0 %v343_v61  ;;  %v342_v63 = vadd.f32 %v340_v56, %v336_v62 }
 0x37e   :  { %v344_v2 = vmax.f32 %v342_v63, 0.0 }
 0x380   :  { %1153 = vmatmul.mubr.f32.vlgmr.msra.gmra.mrb[2].mxu0 %v344_v2 }
 0x453   :  { %v1154_v5 = vpop.f32.mrb[2].mxu0 }
 0x454   :  { %v437_v6 = vadd.f32 %v1154_v5, %v364_v4  ;;  %v431_v7 = vpop.f32.mrb[3].mxu0 }
 0x455   :  { %v432_v8 = vadd.f32 %v431_v7, %v364_v4 }
 0x456   :  { %441 = vst [vmem:[#allocation2 + $0x8] sm:$0xff] %v437_v6 }
 0x457   :  { %440 = vst [vmem:[#allocation2] sm:$0xff] %v432_v8 }
 0x458 LB: > { %s940_s0 = sshll.u32 %s1548_s6, 3  ;;  %v483_v10 = vld [vmem:[%s1775_s4] sm:$0xff]  ;;  %v675_v11 = vld [vmem:[#allocation10 + $0x8] sm:$0xff]  ;;  %v677_v15 = vld [vmem:[#allocation10 + $0x18] sm:$0xff]  ;;  %vm488_vm0 = vcmask 64512   ;;  %s958_s29 = smul.u32 96, %s1548_s6  ;;  %s1548_s6 = sphi %s1719_s6, %s447_s6  }
 0x459   : > { %s449_s25 = scalar_lea.vmem [#allocation2], %s940_s0  ;;  %1155 = vmatprep.subr.mxu0 %v483_v10  ;;  %v678_v12 = vld [vmem:[#allocation10 + $0x20] sm:$0xff]  ;;  %v676_v16 = vld [vmem:[#allocation10 + $0x10] sm:$0xff]  ;;  %v679_v18 = vld [vmem:[#allocation10 + $0x28] sm:$0xff]  ;;  %s447_s6 = sadd.s32 1, %s1548_s6  }
 0x45a   : > { %1156 = vmatpush3.msra.mxu0 %v483_v10  ;;  %v1315_v13 = vpack.c.bf16 %v678_v12, %v675_v11  ;;  %v674_v14 = vld [vmem:[#allocation10] sm:$0xff]  ;;  %v681_v19 = vld [vmem:[#allocation10 + $0x38] sm:$0xff]  ;;  %v684_v20 = vld [vmem:[#allocation10 + $0x50] sm:$0xff]  ;;  %v1347_v21 = vpack.c.bf16 %v679_v18, %v676_v16  ;;  %s1754_s10 = scalar_lea.vmem %s1778_s7, %s958_s29  ;;  %p444_p6 = scmp.ge.s32.totalorder %s447_s6, 2  }
 0x45b   : > { %v1317_v17 = vpack.c.bf16 %v677_v15, %v674_v14  ;;  %v1319_v22 = vpack.c.bf16 %v684_v20, %v681_v19  ;;  %v680_v23 = vld [vmem:[#allocation10 + $0x30] sm:$0xff]  ;;  %v683_v24 = vld [vmem:[#allocation10 + $0x48] sm:$0xff]  ;;  %v690_v27 = vld [vmem:[#allocation10 + $0x80] sm:$0xff] }
 0x45c   : > { %1316 = vmatprep.subr.bf16.mxu1 %v1315_v13  ;;  %1348 = vmatprep.subr.bf16.mxu0 %v1347_v21  ;;  %v1321_v25 = vpack.c.bf16 %v683_v24, %v680_v23  ;;  %v687_v26 = vld [vmem:[#allocation10 + $0x68] sm:$0xff]  ;;  %v686_v29 = vld [vmem:[#allocation10 + $0x60] sm:$0xff]  ;;  %v689_v30 = vld [vmem:[#allocation10 + $0x78] sm:$0xff] }
 0x45d   : > { %1318 = vmatpush1.bf16.msra.mxu1 %v1317_v17  ;;  %v1323_v28 = vpack.c.bf16 %v690_v27, %v687_v26  ;;  %v1325_v31 = vpack.c.bf16 %v689_v30, %v686_v29  ;;  %v693_v32 = vld [vmem:[#allocation10 + $0x98] sm:$0xff]  ;;  %v696_v33 = vld [vmem:[#allocation10 + $0xb0] sm:$0xff]  ;;  %v695_v36 = vld [vmem:[#allocation10 + $0xa8] sm:$0xff] }
 0x45e   : > { %v450_v9 = vld [vmem:[%s449_s25] sm:$0xff]  ;;  %1320 = vmatprep.subr.bf16.mxu1 %v1319_v22  ;;  %v1327_v34 = vpack.c.bf16 %v696_v33, %v693_v32  ;;  %v692_v35 = vld [vmem:[#allocation10 + $0x90] sm:$0xff]  ;;  %v699_v38 = vld [vmem:[#allocation10 + $0xc8] sm:$0xff] }
 0x45f   : > { %451 = vxpose.xlu0.b32.start.end [1/1] (short) %v450_v9, 128  ;;  %v1329_v37 = vpack.c.bf16 %v695_v36, %v692_v35  ;;  %v702_v39 = vld [vmem:[#allocation10 + $0xe0] sm:$0xff]  ;;  %v701_v42 = vld [vmem:[#allocation10 + $0xd8] sm:$0xff]  ;;  %v708_v45 = vld [vmem:[#allocation10 + $0x110] sm:$0xff] }
 0x460   : > { %v1331_v40 = vpack.c.bf16 %v702_v39, %v699_v38  ;;  %v698_v41 = vld [vmem:[#allocation10 + $0xc0] sm:$0xff]  ;;  %v705_v44 = vld [vmem:[#allocation10 + $0xf8] sm:$0xff]  ;;  %v704_v47 = vld [vmem:[#allocation10 + $0xf0] sm:$0xff]  ;;  %v1560_v39 = vmov 0.0  }
 0x461   : > { %1322 = vmatpush1.bf16.msra.mxu1 %v1321_v25  ;;  %v1333_v43 = vpack.c.bf16 %v701_v42, %v698_v41  ;;  %v1335_v46 = vpack.c.bf16 %v708_v45, %v705_v44  ;;  %v707_v48 = vld [vmem:[#allocation10 + $0x108] sm:$0xff]  ;;  %v714_v51 = vld [vmem:[#allocation10 + $0x140] sm:$0xff]  ;;  %v713_v56 = vld [vmem:[#allocation10 + $0x138] sm:$0xff]  ;;  %798 = vmatprep.mubr.f32.mxu1 %v1560_v39 }
 0x462   : > { %1324 = vmatprep.subr.bf16.mxu1 %v1323_v28  ;;  %v1337_v49 = vpack.c.bf16 %v707_v48, %v704_v47  ;;  %v711_v50 = vld [vmem:[#allocation10 + $0x128] sm:$0xff]  ;;  %v710_v54 = vld [vmem:[#allocation10 + $0x120] sm:$0xff]  ;;  %v685_v60 = vld [vmem:[#allocation10 + $0x58] sm:$0xff] }
 0x463   : > { %v1339_v52 = vpack.c.bf16 %v714_v51, %v711_v50  ;;  %v1341_v57 = vpack.c.bf16 %v713_v56, %v710_v54  ;;  %v682_v59 = vld [vmem:[#allocation10 + $0x40] sm:$0xff]  ;;  %v688_v63 = vld [vmem:[#allocation10 + $0x70] sm:$0xff]  ;;  %v691_v2 = vld [vmem:[#allocation10 + $0x88] sm:$0xff] }
 0x464   : > { %v1351_v61 = vpack.c.bf16 %v685_v60, %v682_v59  ;;  %v1355_v3 = vpack.c.bf16 %v691_v2, %v688_v63  ;;  %v694_v5 = vld [vmem:[#allocation10 + $0xa0] sm:$0xff]  ;;  %v697_v6 = vld [vmem:[#allocation10 + $0xb8] sm:$0xff]  ;;  %v700_v9 = vld [vmem:[#allocation10 + $0xd0] sm:$0xff] }
 0x465   : > { %1326 = vmatpush1.bf16.msra.mxu1 %v1325_v31  ;;  %v1359_v7 = vpack.c.bf16 %v697_v6, %v694_v5  ;;  %v703_v10 = vld [vmem:[#allocation10 + $0xe8] sm:$0xff]  ;;  %v706_v13 = vld [vmem:[#allocation10 + $0x100] sm:$0xff]  ;;  %v709_v14 = vld [vmem:[#allocation10 + $0x118] sm:$0xff]  ;;  %v724_v6 = vsub.s32 7, %v1703_v53 }
 0x466   : > { %1328 = vmatprep.subr.bf16.mxu1 %v1327_v34  ;;  %v1363_v11 = vpack.c.bf16 %v703_v10, %v700_v9  ;;  %v1367_v15 = vpack.c.bf16 %v709_v14, %v706_v13  ;;  %v712_v17 = vld [vmem:[#allocation10 + $0x130] sm:$0xff]  ;;  %v715_v18 = vld [vmem:[#allocation10 + $0x148] sm:$0xff]  ;;  %v717_v29 = vld [vmem:[#allocation10 + $0x158] sm:$0xff] }
 0x467   : > { %v1371_v19 = vpack.c.bf16 %v715_v18, %v712_v17  ;;  %v720_v30 = vld [vmem:[#allocation10 + $0x170] sm:$0xff]  ;;  %v719_v33 = vld [vmem:[#allocation10 + $0x168] sm:$0xff]  ;;  %v718_v34 = vld [vmem:[#allocation10 + $0x160] sm:$0xff]  ;;  %v733_v9 = vrot.slane %v1701_v1, %v724_v6 }
 0x468   : > { %v1343_v31 = vpack.c.bf16 %v720_v30, %v717_v29  ;;  %v716_v32 = vld [vmem:[#allocation10 + $0x150] sm:$0xff]  ;;  %v721_v36 = vld [vmem:[#allocation10 + $0x178] sm:$0xff] }
 0x469   : > { %1330 = vmatpush1.bf16.msra.mxu1 %v1329_v37  ;;  %v1345_v35 = vpack.c.bf16 %v719_v33, %v716_v32  ;;  %v1375_v38 = vpack.c.bf16 %v721_v36, %v718_v34 }
 0x46a   : > { %1332 = vmatprep.subr.bf16.mxu1 %v1331_v40  ;;  %v486_v40 = vsub.s32 6, %v1703_v53 }
 0x46c   : > { %v487_v41 = vrot.slane %v1706_v55, %v486_v40 }
 0x46d   : > { %1334 = vmatpush1.bf16.msra.mxu1 %v1333_v43 }
 0x46e   : > { %1336 = vmatprep.subr.bf16.mxu1 %v1335_v46 }
 0x471   : > { %1338 = vmatpush1.bf16.msra.mxu1 %v1337_v49 }
 0x472   : > { %1340 = vmatprep.subr.bf16.mxu1 %v1339_v52 }
 0x475   : > { %1342 = vmatpush1.bf16.msra.mxu1 %v1341_v57 }
 0x476   : > { %1344 = vmatprep.subr.bf16.mxu1 %v1343_v31 }
 0x479   : > { %1346 = vmatpush1.bf16.msra.mxu1 %v1345_v35 }
 0x4df   : > { %v467_v58 = vpop.trf.xlu0 }
 0x4e0   : > { %1157 = vmatprep.mubr.msk.f32.mxu0 %vm488_vm0, %v467_v58 }
 0x4e3   : > { %v468_v62 = vpop.trf.xlu0 }
 0x4e4   : > { %1158 = vmatmul.mubr.msk.f32.vlgmr.msra.gmra.mrb[0].mxu0 %vm488_vm0, %v468_v62 }
 0x4e5   : > { %1350 = vmatpush3.bf16.msra.mxu0 %v1347_v21 }
 0x4e6   : > { %1352 = vmatprep.subr.bf16.mxu0 %v1351_v61 }
 0x4e7   : > { %v469_v4 = vpop.trf.xlu0 }
 0x4e8   : > { %1160 = vmatprep.mubr.msk.f32.mxu0 %vm488_vm0, %v469_v4 }
 0x4e9   : > { %1354 = vmatpush3.bf16.msra.mxu0 %v1351_v61 }
 0x4ea   : > { %1356 = vmatprep.subr.bf16.mxu0 %v1355_v3 }
 0x4eb   : > { %v470_v8 = vpop.trf.xlu0 }
 0x4ec   : > { %1161 = vmatmul.mubr.msk.f32.gmra.mrb[2].mxu0 %vm488_vm0, %v470_v8  ;;  %v729_v8 = vrot.slane %v1699_v0, %v724_v6 }
 0x4ed   : > { %1358 = vmatpush3.bf16.msra.mxu0 %v1355_v3 }
 0x4ee   : > { %1360 = vmatprep.subr.bf16.mxu0 %v1359_v7 }
 0x4ef   : > { %v471_v12 = vpop.trf.xlu0 }
 0x4f0   : > { %1163 = vmatprep.mubr.msk.f32.mxu0 %vm488_vm0, %v471_v12 }
 0x4f1   : > { %1362 = vmatpush3.bf16.msra.mxu0 %v1359_v7  ;;  %v725_v7 = vrot.slane %v1706_v55, %v724_v6 }
 0x4f2   : > { %1364 = vmatprep.subr.bf16.mxu0 %v1363_v11 }
 0x4f3   : > { %v472_v16 = vpop.trf.xlu0 }
 0x4f4   : > { %1164 = vmatmul.mubr.msk.f32.gmra.mrb[4].mxu0 %vm488_vm0, %v472_v16 }
 0x4f5   : > { %1366 = vmatpush3.bf16.msra.mxu0 %v1363_v11 }
 0x4f6   : > { %1368 = vmatprep.subr.bf16.mxu0 %v1367_v15 }
 0x4f7   : > { %v473_v20 = vpop.trf.xlu0 }
 0x4f8   : > { %1166 = vmatprep.mubr.msk.f32.mxu0 %vm488_vm0, %v473_v20 }
 0x4f9   : > { %1370 = vmatpush3.bf16.msra.mxu0 %v1367_v15 }
 0x4fa   : > { %1372 = vmatprep.subr.bf16.mxu0 %v1371_v19 }
 0x4fb   : > { %v474_v21 = vpop.trf.xlu0 }
 0x4fc   : > { %1167 = vmatmul.mubr.msk.f32.gmra.mrb[6].mxu0 %vm488_vm0, %v474_v21 }
 0x4fd   : > { %1374 = vmatpush3.bf16.msra.mxu0 %v1371_v19 }
 0x4fe   : > { %1376 = vmatprep.subr.bf16.mxu0 %v1375_v38 }
 0x4ff   : > { %v475_v22 = vpop.trf.xlu0 }
 0x500   : > { %1169 = vmatprep.mubr.msk.f32.mxu0 %vm488_vm0, %v475_v22 }
 0x501   : > { %1378 = vmatpush3.bf16.msra.mxu0 %v1375_v38 }
 0x503   : > { %v476_v23 = vpop.trf.xlu0 }
 0x504   : > { %1170 = vmatmul.mubr.msk.f32.gmra.mrb[8].mxu0 %vm488_vm0, %v476_v23 }
 0x507   : > { %v477_v24 = vpop.trf.xlu0 }
 0x508   : > { %1172 = vmatprep.mubr.msk.f32.mxu0 %vm488_vm0, %v477_v24 }
 0x50b   : > { %v478_v25 = vpop.trf.xlu0 }
 0x50c   : > { %1173 = vmatmul.mubr.msk.f32.gmra.mrb[10].mxu0 %vm488_vm0, %v478_v25 }
 0x50f   : > { %v479_v26 = vpop.trf.xlu0 }
 0x510   : > { %1175 = vmatprep.mubr.msk.f32.mxu0 %vm488_vm0, %v479_v26 }
 0x513   : > { %v480_v27 = vpop.trf.xlu0 }
 0x514   : > { %1176 = vmatmul.mubr.msk.f32.gmra.mrb[12].mxu0 %vm488_vm0, %v480_v27 }
 0x517   : > { %v481_v28 = vpop.trf.xlu0 }
 0x518   : > { %1178 = vmatprep.mubr.msk.f32.mxu0 %vm488_vm0, %v481_v28 }
 0x51b   : > { %v482_v37 = vpop.trf.xlu0 }
 0x51c   : > { %1179 = vmatmul.mubr.msk.f32.gmra.mrb[14].mxu0 %vm488_vm0, %v482_v37 }
 0x5b7   : > { %v1159_v42 = vpop.f32.mrb[0].mxu0 }
 0x5b8   : > { %v609_v43 = vadd.f32 %v1159_v42, %v487_v41  ;;  %v603_v44 = vpop.f32.mrb[1].mxu0 }
 0x5b9   : > { %v604_v45 = vadd.f32 %v603_v44, %v487_v41 }
 0x5ba   : > { %v671_v47 = vmax.f32 %v609_v43, 0.0 }
 0x5bb   : > { %v670_v46 = vmax.f32 %v604_v45, 0.0 }
 0x5bd   : > { %799 = vmatmul.mubr.f32.vlgmr.msra.gmra.mrb[0].mxu1 %v670_v46  ;;  %1213 = vmatprep.mubr.f32.mxu0 %v670_v46 }
 0x5be   : > { %1214 = vmatmul.mubr.f32.vlgmr.msra.gmra.mrb[16].mxu0 %v671_v47  ;;  %804 = vmatprep.mubr.f32.mxu1 %v1560_v39 }
 0x5bf   : > { %v1162_v48 = vpop.f32.mrb[2].mxu0 }
 0x5c0   : > { %v619_v49 = vadd.f32 %v1162_v48, %v487_v41  ;;  %v613_v50 = vpop.f32.mrb[3].mxu0 }
 0x5c1   : > { %v614_v51 = vadd.f32 %v613_v50, %v487_v41  ;;  %805 = vmatmul.mubr.f32.gmra.mrb[2].mxu1 %v671_v47 }
 0x5c2   : > { %810 = vmatprep.mubr.f32.mxu1 %v1560_v39  ;;  %v673_v54 = vmax.f32 %v619_v49, 0.0 }
 0x5c3   : > { %v672_v52 = vmax.f32 %v614_v51, 0.0 }
 0x5c5   : > { %811 = vmatmul.mubr.f32.gmra.mrb[4].mxu1 %v672_v52  ;;  %1216 = vmatprep.mubr.f32.mxu0 %v672_v52 }
 0x5c6   : > { %1217 = vmatmul.mubr.f32.gmra.mrb[18].mxu0 %v673_v54  ;;  %816 = vmatprep.mubr.f32.mxu1 %v1560_v39 }
 0x5c7   : > { %v1165_v56 = vpop.f32.mrb[4].mxu0 }
 0x5c8   : > { %v623_v57 = vpop.f32.mrb[5].mxu0 }
 0x5c9   : > { %817 = vmatmul.mubr.f32.gmra.mrb[6].mxu1 %v673_v54 }
 0x5cf   : > { %v1168_v58 = vpop.f32.mrb[6].mxu0 }
 0x5d0   : > { %v631_v59 = vpop.f32.mrb[7].mxu0 }
 0x5d7   : > { %v1171_v60 = vpop.f32.mrb[8].mxu0 }
 0x5d8   : > { %v639_v61 = vpop.f32.mrb[9].mxu0 }
 0x5df   : > { %v1174_v62 = vpop.f32.mrb[10].mxu0 }
 0x5e0   : > { %v647_v63 = vpop.f32.mrb[11].mxu0 }
 0x5e7   : > { %v1177_v2 = vpop.f32.mrb[12].mxu0 }
 0x5e8   : > { %v655_v3 = vpop.f32.mrb[13].mxu0 }
 0x5ef   : > { %v1180_v4 = vpop.f32.mrb[14].mxu0 }
 0x5f0   : > { %v663_v5 = vpop.f32.mrb[15].mxu0 }
 0x690   : > { %v800_v10 = vpop.f32.mrb[0].mxu1 }
 0x691   : > { %v801_v11 = vadd.f32 %v800_v10, %v725_v7  ;;  %v802_v12 = vpop.f32.mrb[1].mxu1  ;;  %v1215_v13 = vpop.f32.mrb[16].mxu0 }
 0x692   : > { %v803_v14 = vadd.f32 %v802_v12, %v729_v8  ;;  %v895_v15 = vadd.f32 %v1215_v13, %v733_v9  ;;  %v889_v16 = vpop.f32.mrb[17].mxu0 }
 0x693   : > { %911 = vst [vmem:[%s1754_s10] sm:$0xff] %v801_v11  ;;  %v890_v17 = vadd.f32 %v889_v16, %v733_v9 }
 0x694   : > { %912 = vst [vmem:[%s1754_s10 + $0x8] sm:$0xff] %v803_v14  ;;  %916 = vst [vmem:[%s1754_s10 + $0x28] sm:$0xff] %v895_v15  ;;  %v806_v18 = vpop.f32.mrb[2].mxu1 }
 0x695   : > { %913 = vst [vmem:[%s1754_s10 + $0x10] sm:$0xff] %v890_v17  ;;  %v807_v19 = vadd.f32 %v806_v18, %v725_v7  ;;  %v808_v20 = vpop.f32.mrb[3].mxu1 }
 0x696   : > { %v809_v21 = vadd.f32 %v808_v20, %v729_v8 }
 0x697   : > { %914 = vst [vmem:[%s1754_s10 + $0x18] sm:$0xff] %v807_v19 }
 0x698   : > { %915 = vst [vmem:[%s1754_s10 + $0x20] sm:$0xff] %v809_v21  ;;  %v812_v22 = vpop.f32.mrb[4].mxu1 }
 0x699   : > { %v813_v23 = vadd.f32 %v812_v22, %v725_v7  ;;  %v814_v24 = vpop.f32.mrb[5].mxu1  ;;  %v1218_v25 = vpop.f32.mrb[18].mxu0 }
 0x69a   : > { %v815_v26 = vadd.f32 %v814_v24, %v729_v8  ;;  %v905_v27 = vadd.f32 %v1218_v25, %v733_v9  ;;  %v899_v28 = vpop.f32.mrb[19].mxu0  ;;  %446 = sbr.rel (!%p444_p6) target bundleno = 1112 (0x458), region = 81 }
 0x69b   : > { %917 = vst [vmem:[%s1754_s10 + $0x30] sm:$0xff] %v813_v23  ;;  %v900_v29 = vadd.f32 %v899_v28, %v733_v9 }
 0x69c   : > { %918 = vst [vmem:[%s1754_s10 + $0x38] sm:$0xff] %v815_v26  ;;  %922 = vst [vmem:[%s1754_s10 + $0x58] sm:$0x1] %v905_v27  ;;  %v818_v30 = vpop.f32.mrb[6].mxu1 }
 0x69d   : > { %919 = vst [vmem:[%s1754_s10 + $0x40] sm:$0xff] %v900_v29  ;;  %v819_v31 = vadd.f32 %v818_v30, %v725_v7  ;;  %v820_v32 = vpop.f32.mrb[7].mxu1 }
 0x69e   : > { %v821_v33 = vadd.f32 %v820_v32, %v729_v8 }
 0x69f   : > { %920 = vst [vmem:[%s1754_s10 + $0x48] sm:$0x1] %v819_v31 }
 0x6a0   : > { %921 = vst [vmem:[%s1754_s10 + $0x50] sm:$0x1] %v821_v33 }
 0x6a1   :  { %927 = vsyncpa [#allocation4], 1 }
 0x6a2   :  { %928 = vsyncpa [#allocation6], 1 }
 0x6a3   :  { %929 = vsyncpa [#allocation9], 1 }
 0x6a4   :  { %930 = vsyncpa [#allocation12], 1 }

</bundles_post_ra>
